<compile_context>
chip_gen: v5e
topology: v5e:2x2
jax: 0.10.0
libtpu: 0.0.40
codegen_flags: <defaults>
</compile_context>

<pallas_src>
import jax
import jax.numpy as jnp
from jax.experimental import pallas as pl
from jax.experimental.pallas import tpu as pltpu

LABEL_NAMES = ["a", "b", "c"]

LANE_TILE = 512   # lanes (batch elements) per grid step; multiple of 128

# Flat parameter layout (f32[30], lives in SMEM):
#   per layer (6 scalars): W[0,0], W[0,1], W[1,0], W[1,1], b[0], b[1]
#   layer order: backbone-1 (0), backbone-2 (6), head a (12), head b (18), head c (24)
_BASE = {"h1": 0, "h2": 6, "a": 12, "b": 18, "c": 24}


def _round_up(n, m):
    return ((n + m - 1) // m) * m


def _mtl_kernel(p_ref, x_ref, out_ref):
    """Backbone (2x Linear+ReLU) + three Linear heads, batch on the lane axis.

    x_ref   : (2, LT)  VMEM  -- row f = feature f across LT batch elements
    p_ref   : (30,)    SMEM  -- weight/bias scalars (scalar-broadcast path)
    out_ref : (8, LT)  VMEM  -- rows 0-1 shared_rep, 2-3 head a, 4-5 b, 6-7 c
    """
    x0 = x_ref[0:1, :]                                   # (1, LT)
    x1 = x_ref[1:2, :]                                   # (1, LT)

    def linear_pair(h0, h1, base):
        # y[:, o] = W[0,o]*h0 + W[1,o]*h1 + b[o]  (scalar * vector on the VPU)
        y0 = p_ref[base + 0] * h0 + p_ref[base + 2] * h1 + p_ref[base + 4]
        y1 = p_ref[base + 1] * h0 + p_ref[base + 3] * h1 + p_ref[base + 5]
        return y0, y1

    h0, h1 = linear_pair(x0, x1, _BASE["h1"])
    h0 = jnp.maximum(h0, 0.0)
    h1 = jnp.maximum(h1, 0.0)

    s0, s1 = linear_pair(h0, h1, _BASE["h2"])
    s0 = jnp.maximum(s0, 0.0)
    s1 = jnp.maximum(s1, 0.0)

    a0, a1 = linear_pair(s0, s1, _BASE["a"])
    b0, b1 = linear_pair(s0, s1, _BASE["b"])
    c0, c1 = linear_pair(s0, s1, _BASE["c"])

    # One full-tile, unmasked store of the lane-dense output slab.
    out_ref[...] = jnp.concatenate([s0, s1, a0, a1, b0, b1, c0, c1], axis=0)


def pack_params(params):
    """Flatten 5 (2,2) weights + 5 (2,) biases into one f32[30] array (once, at init)."""
    vals = []
    for w_key, b_key in (("w1", "b1"), ("w2", "b2"),
                         ("wa", "ba"), ("wb", "bb"), ("wc", "bc")):
        w = jnp.asarray(params[w_key], jnp.float32).reshape(-1)   # W[0,0],W[0,1],W[1,0],W[1,1]
        b = jnp.asarray(params[b_key], jnp.float32).reshape(-1)   # b[0], b[1]
        vals.append(jnp.concatenate([w, b]))
    return jnp.concatenate(vals)                                  # (30,)


@jax.jit
def mtl_forward(x, params_flat):
    """x: (B, 2) f32; params_flat: (30,) f32 from pack_params."""
    B, D = x.shape
    assert D == 2, f"expected feature dim 2, got {D}"

    lt = min(LANE_TILE, _round_up(B, 128))    # lane tile (>=128, multiple of 128)
    nb = pl.cdiv(B, lt)                       # grid steps over the batch/lane axis
    bp = nb * lt

    # Tiny transpose + pad: only (2, bp) f32 crosses the pallas_call boundary.
    x_t = jnp.zeros((2, bp), jnp.float32).at[:, :B].set(x.astype(jnp.float32).T)

    out = pl.pallas_call(
        _mtl_kernel,
        out_shape=jax.ShapeDtypeStruct((8, bp), jnp.float32),
        grid_spec=pltpu.PrefetchScalarGridSpec(
            num_scalar_prefetch=0,
            grid=(nb,),
            in_specs=[
                # 30 weight/bias scalars, resident in SMEM (scalar-broadcast path).
                pl.BlockSpec(memory_space=pltpu.MemorySpace.SMEM),
                # batch tile: features on sublanes, batch on lanes.
                pl.BlockSpec((2, lt), lambda i: (0, i)),
            ],
            out_specs=pl.BlockSpec((8, lt), lambda i: (0, i)),
        ),
        compiler_params=pltpu.CompilerParams(
            dimension_semantics=("parallel",)),
        cost_estimate=pl.CostEstimate(
            flops=40 * bp,                       # 5 layers x (2 mul + 2 add) x 2 outs
            transcendentals=0,
            bytes_accessed=(2 * bp + 8 * bp + 30) * 4),
    )(params_flat, x_t)

    return {
        "a": out[2:4, :B].T,
        "b": out[4:6, :B].T,
        "c": out[6:8, :B].T,
        "shared_rep": out[0:2, :B].T,
    }


def init_params(key):
    """Deterministic init mimicking torch.nn.Linear default (U[-1/sqrt(in), +])."""
    def linear(k, fan_in=2, fan_out=2):
        kw, kb = jax.random.split(k)
        bound = 1.0 / jnp.sqrt(fan_in)
        # stored as (in, out) so forward computes x @ W + b
        w = jax.random.uniform(kw, (fan_in, fan_out), jnp.float32, -bound, bound)
        b = jax.random.uniform(kb, (fan_out,), jnp.float32, -bound, bound)
        return w, b

    keys = jax.random.split(key, 5)
    w1, b1 = linear(keys[0])
    w2, b2 = linear(keys[1])
    wa, ba = linear(keys[2])
    wb, bb = linear(keys[3])
    wc, bc = linear(keys[4])
    return dict(w1=w1, b1=b1, w2=w2, b2=b2,
                wa=wa, ba=ba, wb=wb, bb=bb, wc=wc, bc=bc)


def reference_forward(x, p):
    """Pure-JAX reference matching the PyTorch module semantics."""
    h = jnp.maximum(x @ p["w1"] + p["b1"], 0.0)
    shared = jnp.maximum(h @ p["w2"] + p["b2"], 0.0)
    return {
        "a": shared @ p["wa"] + p["ba"],
        "b": shared @ p["wb"] + p["bb"],
        "c": shared @ p["wc"] + p["bc"],
        "shared_rep": shared,
    }


if __name__ == "__main__":
    key = jax.random.PRNGKey(0)
    kx, kp = jax.random.split(key)

    B = 4
    x = jax.random.normal(kx, (B, 2), jnp.float32)
    params = init_params(kp)
    params_flat = pack_params(params)        # one-time packing, off the hot path

    out = mtl_forward(x, params_flat)
    out = jax.tree_util.tree_map(jax.block_until_ready, out)

    ref = reference_forward(x, params)
    for name in LABEL_NAMES + ["shared_rep"]:
        assert out[name].shape == (B, 2), (name, out[name].shape)
        assert jnp.allclose(out[name], ref[name], atol=1e-5, rtol=1e-5), name

    print("KERNEL_OK")
</pallas_src>

<mosaic_0001>
module attributes {stable_mosaic.version = 11 : i64} {
  func.func @_mtl_kernel(%arg0: i32, %arg1: memref<30xf32, #tpu.memory_space<smem>>, %arg2: memref<2x128xf32, #tpu.memory_space<vmem>>, %arg3: memref<8x128xf32, #tpu.memory_space<vmem>>) attributes {dimension_semantics = [#tpu.dimension_semantics<parallel>], iteration_bounds = array<i64: 1>, scalar_prefetch = 0 : i64, scratch_operands = 0 : i64, tpu.core_type = #tpu.core_type<tc>, window_params = [{transform_indices = @transform_0, window_bounds = array<i64: 30>}, {transform_indices = @transform_1, window_bounds = array<i64: 2, 128>}, {transform_indices = @transform_2, window_bounds = array<i64: 8, 128>}]} {
    %c0 = arith.constant 0 : index
    %c0_0 = arith.constant 0 : index
    %0 = vector.load %arg2[%c0, %c0_0] : memref<2x128xf32, #tpu.memory_space<vmem>>, vector<1x128xf32>
    %c1 = arith.constant 1 : index
    %c0_1 = arith.constant 0 : index
    %1 = vector.load %arg2[%c1, %c0_1] : memref<2x128xf32, #tpu.memory_space<vmem>>, vector<1x128xf32>
    %c0_2 = arith.constant 0 : index
    %2 = memref.load %arg1[%c0_2] : memref<30xf32, #tpu.memory_space<smem>>
    %3 = vector.broadcast %2 : f32 to vector<1x128xf32>
    %4 = arith.mulf %3, %0 : vector<1x128xf32>
    %c2 = arith.constant 2 : index
    %5 = memref.load %arg1[%c2] : memref<30xf32, #tpu.memory_space<smem>>
    %6 = vector.broadcast %5 : f32 to vector<1x128xf32>
    %7 = arith.mulf %6, %1 : vector<1x128xf32>
    %8 = arith.addf %4, %7 : vector<1x128xf32>
    %c4 = arith.constant 4 : index
    %9 = memref.load %arg1[%c4] : memref<30xf32, #tpu.memory_space<smem>>
    %10 = vector.broadcast %9 : f32 to vector<1x128xf32>
    %11 = arith.addf %8, %10 : vector<1x128xf32>
    %c1_3 = arith.constant 1 : index
    %12 = memref.load %arg1[%c1_3] : memref<30xf32, #tpu.memory_space<smem>>
    %13 = vector.broadcast %12 : f32 to vector<1x128xf32>
    %14 = arith.mulf %13, %0 : vector<1x128xf32>
    %c3 = arith.constant 3 : index
    %15 = memref.load %arg1[%c3] : memref<30xf32, #tpu.memory_space<smem>>
    %16 = vector.broadcast %15 : f32 to vector<1x128xf32>
    %17 = arith.mulf %16, %1 : vector<1x128xf32>
    %18 = arith.addf %14, %17 : vector<1x128xf32>
    %c5 = arith.constant 5 : index
    %19 = memref.load %arg1[%c5] : memref<30xf32, #tpu.memory_space<smem>>
    %20 = vector.broadcast %19 : f32 to vector<1x128xf32>
    %21 = arith.addf %18, %20 : vector<1x128xf32>
    %cst = arith.constant 0.000000e+00 : f32
    %22 = vector.broadcast %cst : f32 to vector<1x128xf32>
    %23 = arith.maximumf %11, %22 : vector<1x128xf32>
    %cst_4 = arith.constant 0.000000e+00 : f32
    %24 = vector.broadcast %cst_4 : f32 to vector<1x128xf32>
    %25 = arith.maximumf %21, %24 : vector<1x128xf32>
    %c6 = arith.constant 6 : index
    %26 = memref.load %arg1[%c6] : memref<30xf32, #tpu.memory_space<smem>>
    %27 = vector.broadcast %26 : f32 to vector<1x128xf32>
    %28 = arith.mulf %27, %23 : vector<1x128xf32>
    %c8 = arith.constant 8 : index
    %29 = memref.load %arg1[%c8] : memref<30xf32, #tpu.memory_space<smem>>
    %30 = vector.broadcast %29 : f32 to vector<1x128xf32>
    %31 = arith.mulf %30, %25 : vector<1x128xf32>
    %32 = arith.addf %28, %31 : vector<1x128xf32>
    %c10 = arith.constant 10 : index
    %33 = memref.load %arg1[%c10] : memref<30xf32, #tpu.memory_space<smem>>
    %34 = vector.broadcast %33 : f32 to vector<1x128xf32>
    %35 = arith.addf %32, %34 : vector<1x128xf32>
    %c7 = arith.constant 7 : index
    %36 = memref.load %arg1[%c7] : memref<30xf32, #tpu.memory_space<smem>>
    %37 = vector.broadcast %36 : f32 to vector<1x128xf32>
    %38 = arith.mulf %37, %23 : vector<1x128xf32>
    %c9 = arith.constant 9 : index
    %39 = memref.load %arg1[%c9] : memref<30xf32, #tpu.memory_space<smem>>
    %40 = vector.broadcast %39 : f32 to vector<1x128xf32>
    %41 = arith.mulf %40, %25 : vector<1x128xf32>
    %42 = arith.addf %38, %41 : vector<1x128xf32>
    %c11 = arith.constant 11 : index
    %43 = memref.load %arg1[%c11] : memref<30xf32, #tpu.memory_space<smem>>
    %44 = vector.broadcast %43 : f32 to vector<1x128xf32>
    %45 = arith.addf %42, %44 : vector<1x128xf32>
    %cst_5 = arith.constant 0.000000e+00 : f32
    %46 = vector.broadcast %cst_5 : f32 to vector<1x128xf32>
    %47 = arith.maximumf %35, %46 : vector<1x128xf32>
    %cst_6 = arith.constant 0.000000e+00 : f32
    %48 = vector.broadcast %cst_6 : f32 to vector<1x128xf32>
    %49 = arith.maximumf %45, %48 : vector<1x128xf32>
    %c12 = arith.constant 12 : index
    %50 = memref.load %arg1[%c12] : memref<30xf32, #tpu.memory_space<smem>>
    %51 = vector.broadcast %50 : f32 to vector<1x128xf32>
    %52 = arith.mulf %51, %47 : vector<1x128xf32>
    %c14 = arith.constant 14 : index
    %53 = memref.load %arg1[%c14] : memref<30xf32, #tpu.memory_space<smem>>
    %54 = vector.broadcast %53 : f32 to vector<1x128xf32>
    %55 = arith.mulf %54, %49 : vector<1x128xf32>
    %56 = arith.addf %52, %55 : vector<1x128xf32>
    %c16 = arith.constant 16 : index
    %57 = memref.load %arg1[%c16] : memref<30xf32, #tpu.memory_space<smem>>
    %58 = vector.broadcast %57 : f32 to vector<1x128xf32>
    %59 = arith.addf %56, %58 : vector<1x128xf32>
    %c13 = arith.constant 13 : index
    %60 = memref.load %arg1[%c13] : memref<30xf32, #tpu.memory_space<smem>>
    %61 = vector.broadcast %60 : f32 to vector<1x128xf32>
    %62 = arith.mulf %61, %47 : vector<1x128xf32>
    %c15 = arith.constant 15 : index
    %63 = memref.load %arg1[%c15] : memref<30xf32, #tpu.memory_space<smem>>
    %64 = vector.broadcast %63 : f32 to vector<1x128xf32>
    %65 = arith.mulf %64, %49 : vector<1x128xf32>
    %66 = arith.addf %62, %65 : vector<1x128xf32>
    %c17 = arith.constant 17 : index
    %67 = memref.load %arg1[%c17] : memref<30xf32, #tpu.memory_space<smem>>
    %68 = vector.broadcast %67 : f32 to vector<1x128xf32>
    %69 = arith.addf %66, %68 : vector<1x128xf32>
    %c18 = arith.constant 18 : index
    %70 = memref.load %arg1[%c18] : memref<30xf32, #tpu.memory_space<smem>>
    %71 = vector.broadcast %70 : f32 to vector<1x128xf32>
    %72 = arith.mulf %71, %47 : vector<1x128xf32>
    %c20 = arith.constant 20 : index
    %73 = memref.load %arg1[%c20] : memref<30xf32, #tpu.memory_space<smem>>
    %74 = vector.broadcast %73 : f32 to vector<1x128xf32>
    %75 = arith.mulf %74, %49 : vector<1x128xf32>
    %76 = arith.addf %72, %75 : vector<1x128xf32>
    %c22 = arith.constant 22 : index
    %77 = memref.load %arg1[%c22] : memref<30xf32, #tpu.memory_space<smem>>
    %78 = vector.broadcast %77 : f32 to vector<1x128xf32>
    %79 = arith.addf %76, %78 : vector<1x128xf32>
    %c19 = arith.constant 19 : index
    %80 = memref.load %arg1[%c19] : memref<30xf32, #tpu.memory_space<smem>>
    %81 = vector.broadcast %80 : f32 to vector<1x128xf32>
    %82 = arith.mulf %81, %47 : vector<1x128xf32>
    %c21 = arith.constant 21 : index
    %83 = memref.load %arg1[%c21] : memref<30xf32, #tpu.memory_space<smem>>
    %84 = vector.broadcast %83 : f32 to vector<1x128xf32>
    %85 = arith.mulf %84, %49 : vector<1x128xf32>
    %86 = arith.addf %82, %85 : vector<1x128xf32>
    %c23 = arith.constant 23 : index
    %87 = memref.load %arg1[%c23] : memref<30xf32, #tpu.memory_space<smem>>
    %88 = vector.broadcast %87 : f32 to vector<1x128xf32>
    %89 = arith.addf %86, %88 : vector<1x128xf32>
    %c24 = arith.constant 24 : index
    %90 = memref.load %arg1[%c24] : memref<30xf32, #tpu.memory_space<smem>>
    %91 = vector.broadcast %90 : f32 to vector<1x128xf32>
    %92 = arith.mulf %91, %47 : vector<1x128xf32>
    %c26 = arith.constant 26 : index
    %93 = memref.load %arg1[%c26] : memref<30xf32, #tpu.memory_space<smem>>
    %94 = vector.broadcast %93 : f32 to vector<1x128xf32>
    %95 = arith.mulf %94, %49 : vector<1x128xf32>
    %96 = arith.addf %92, %95 : vector<1x128xf32>
    %c28 = arith.constant 28 : index
    %97 = memref.load %arg1[%c28] : memref<30xf32, #tpu.memory_space<smem>>
    %98 = vector.broadcast %97 : f32 to vector<1x128xf32>
    %99 = arith.addf %96, %98 : vector<1x128xf32>
    %c25 = arith.constant 25 : index
    %100 = memref.load %arg1[%c25] : memref<30xf32, #tpu.memory_space<smem>>
    %101 = vector.broadcast %100 : f32 to vector<1x128xf32>
    %102 = arith.mulf %101, %47 : vector<1x128xf32>
    %c27 = arith.constant 27 : index
    %103 = memref.load %arg1[%c27] : memref<30xf32, #tpu.memory_space<smem>>
    %104 = vector.broadcast %103 : f32 to vector<1x128xf32>
    %105 = arith.mulf %104, %49 : vector<1x128xf32>
    %106 = arith.addf %102, %105 : vector<1x128xf32>
    %c29 = arith.constant 29 : index
    %107 = memref.load %arg1[%c29] : memref<30xf32, #tpu.memory_space<smem>>
    %108 = vector.broadcast %107 : f32 to vector<1x128xf32>
    %109 = arith.addf %106, %108 : vector<1x128xf32>
    %110 = tpu.concatenate %47, %49, %59, %69, %79, %89, %99, %109 in 0 : vector<1x128xf32>, vector<1x128xf32>, vector<1x128xf32>, vector<1x128xf32>, vector<1x128xf32>, vector<1x128xf32>, vector<1x128xf32>, vector<1x128xf32> -> vector<8x128xf32>
    %c0_7 = arith.constant 0 : index
    %c0_8 = arith.constant 0 : index
    %111 = vector.load %arg3[%c0_7, %c0_8] : memref<8x128xf32, #tpu.memory_space<vmem>>, vector<8x128xf32>
    tpu.vector_store %arg3[%c0_7, %c0_8], %110 {strides = array<i32>} : memref<8x128xf32, #tpu.memory_space<vmem>>, vector<8x128xf32>,
    return
  }
  func.func @transform_0(%arg0: i32) -> i32 {
    %c0_i32 = arith.constant 0 : i32
    %c0_i32_0 = arith.constant 0 : i32
    return %c0_i32 : i32
  }
  func.func @transform_1(%arg0: i32) -> (i32, i32) {
    %c0_i32 = arith.constant 0 : i32
    %c0_i32_0 = arith.constant 0 : i32
    return %c0_i32, %arg0 : i32, i32
  }
  func.func @transform_2(%arg0: i32) -> (i32, i32) {
    %c0_i32 = arith.constant 0 : i32
    %c0_i32_0 = arith.constant 0 : i32
    return %c0_i32, %arg0 : i32, i32
  }
}

</mosaic_0001>

<bundles_post_ra>
// kernel: mtl_forward.1
= control target key start
LH: loop header
LB: loop body
LE: loop exit
PB: predicated region body
PF: predicated region fallthrough
CT: control target
= control target key end

     0   :  { %7 = vsyncpa [#allocation3], 0  ;;  %s215_s12 = smov [#allocation2]   ;;  %s303_s0 = inlined_call_operand.vmem [shape: f32[30], index: 0, kind: input, shape index: {}]   ;;  %s304_s1 = inlined_call_operand.vmem [shape: f32[2,128], index: 1, kind: input, shape index: {}]   ;;  %s305_s2 = inlined_call_operand.vmem [shape: f32[8,128], index: 2, kind: output, shape index: {}]  }
   0x1   :  { %s13_s11 = sshll.u32 %s303_s0, 4  ;;  %s14_s11 = int_to_ptr.vmem [resolvable:$true] %s13_s11 }
   0x2   :  { %16 = dma.vmem_to_smem %s14_s11, 16, %s215_s12, [#allocation3]  }
   0x3   :  { %213 = dma.done.wait [#allocation3], 16  }
   0x4   :  { %214 = vsyncadd [#allocation3], 4294967280 }
   0x5   :  { %23 = sfence }
   0x6   :  { %s26_s13 = sld [smem:[#allocation2]]  ;;  %v24_v0 = vld [vmem:[%s304_s1] sm:$0x1]  ;;  %v25_v1 = vld [vmem:[%s304_s1 + $0x1] sm:$0x1]  ;;  %vm151_vm0 = vcmask 1040384  }
   0x7   :  { %s171_s14 = sld [smem:[#allocation2 + $0x2]]  ;;  %vm153_vm1 = vcmask 1041408   ;;  %vm155_vm2 = vcmask 1042432   ;;  %vm157_vm3 = vcmask 1043456   ;;  %vm159_vm4 = vcmask 1044480  }
   0x8   :  { %s172_s15 = sld [smem:[#allocation2 + $0x4]]  ;;  %vm161_vm5 = vcmask 1045504   ;;  %vm163_vm6 = vcmask 1046528  }
   0x9   :  { %s173_s16 = sld [smem:[#allocation2 + $0x1]] }
   0xa   :  { %s174_s19 = sld [smem:[#allocation2 + $0x3]] }
   0xb   :  { %s175_s0 = sld [smem:[#allocation2 + $0x5]] }
   0xc   :  { %v27_v2 = vstv %s26_s13  ;;  %s176_s22 = sld [smem:[#allocation2 + $0x6]] }
   0xd   :  { %v28_v3 = vmul.f32 %v27_v2, %v24_v0  ;;  %v30_v4 = vstv %s171_s14  ;;  %s240_s23 = sld [smem:[#allocation2 + $0x8]] }
   0xe   :  { %v31_v5 = vmul.f32 %v30_v4, %v25_v1  ;;  %s242_s24 = sld [smem:[#allocation2 + $0xa]]  ;;  %v34_v6 = vstv %s172_s15 }
   0xf   :  { %v37_v7 = vstv %s173_s16  ;;  %s179_s25 = sld [smem:[#allocation2 + $0x7]] }
  0x10   :  { %v32_v8 = vadd.f32 %v31_v5, %v28_v3  ;;  %v38_v9 = vmul.f32 %v37_v7, %v24_v0  ;;  %v40_v10 = vstv %s174_s19  ;;  %s180_s26 = sld [smem:[#allocation2 + $0x9]] }
  0x11   :  { %v41_v11 = vmul.f32 %v40_v10, %v25_v1  ;;  %s244_s1 = sld [smem:[#allocation2 + $0xb]]  ;;  %v44_v13 = vstv %s175_s0 }
  0x12   :  { %v35_v12 = vadd.f32 %v34_v6, %v32_v8  ;;  %s246_s27 = sld [smem:[#allocation2 + $0xc]]  ;;  %v49_v16 = vstv %s176_s22 }
  0x13   :  { %v42_v14 = vadd.f32 %v41_v11, %v38_v9  ;;  %s248_s28 = sld [smem:[#allocation2 + $0xe]]  ;;  %v52_v19 = vstv %s240_s23 }
  0x14   :  { %v46_v15 = vmax.f32 %v35_v12, 0.0  ;;  %s250_s29 = sld [smem:[#allocation2 + $0x10]]  ;;  %v56_v26 = vstv %s242_s24 }
  0x15   :  { %v45_v17 = vadd.f32 %v44_v13, %v42_v14  ;;  %v59_v18 = vstv %s179_s25  ;;  %s252_s30 = sld [smem:[#allocation2 + $0xd]] }
  0x16   :  { %v62_v20 = vstv %s180_s26  ;;  %s255_s3 = sld [smem:[#allocation2 + $0xf]]  ;;  %v50_v22 = vmul.f32 %v49_v16, %v46_v15  ;;  %v60_v23 = vmul.f32 %v59_v18, %v46_v15 }
  0x17   :  { %v47_v21 = vmax.f32 %v45_v17, 0.0  ;;  %s257_s4 = sld [smem:[#allocation2 + $0x11]]  ;;  %v66_v27 = vstv %s244_s1 }
  0x18   :  { %s259_s5 = sld [smem:[#allocation2 + $0x12]]  ;;  %v71_v32 = vstv %s246_s27 }
  0x19   :  { %v53_v24 = vmul.f32 %v52_v19, %v47_v21  ;;  %v63_v25 = vmul.f32 %v62_v20, %v47_v21  ;;  %s261_s6 = sld [smem:[#allocation2 + $0x14]]  ;;  %v74_v33 = vstv %s248_s28 }
  0x1a   :  { %s265_s7 = sld [smem:[#allocation2 + $0x16]]  ;;  %v78_v40 = vstv %s250_s29 }
  0x1b   :  { %v54_v28 = vadd.f32 %v53_v24, %v50_v22  ;;  %v64_v29 = vadd.f32 %v63_v25, %v60_v23  ;;  %s267_s8 = sld [smem:[#allocation2 + $0x13]]  ;;  %v81_v34 = vstv %s252_s30 }
  0x1c   :  { %s269_s9 = sld [smem:[#allocation2 + $0x15]]  ;;  %v84_v35 = vstv %s255_s3 }
  0x1d   :  { %v57_v30 = vadd.f32 %v56_v26, %v54_v28  ;;  %v67_v31 = vadd.f32 %v66_v27, %v64_v29  ;;  %s271_s10 = sld [smem:[#allocation2 + $0x17]]  ;;  %v88_v41 = vstv %s257_s4 }
  0x1e   :  { %s277_s11 = sld [smem:[#allocation2 + $0x18]]  ;;  %v91_v38 = vstv %s259_s5 }
  0x1f   :  { %v68_v36 = vmax.f32 %v57_v30, 0.0  ;;  %v69_v37 = vmax.f32 %v67_v31, 0.0  ;;  %v94_v39 = vstv %s261_s6  ;;  %s281_s12 = sld [smem:[#allocation2 + $0x1a]] }
  0x20   :  { %v98_v42 = vstv %s265_s7  ;;  %s286_s13 = sld [smem:[#allocation2 + $0x1c]] }
  0x21   :  { %v72_v43 = vmul.f32 %v71_v32, %v68_v36  ;;  %v75_v44 = vmul.f32 %v74_v33, %v69_v37  ;;  %v82_v45 = vmul.f32 %v81_v34, %v68_v36  ;;  %v85_v46 = vmul.f32 %v84_v35, %v69_v37  ;;  %s197_s14 = sld [smem:[#allocation2 + $0x19]] }
  0x22   :  { %v92_v47 = vmul.f32 %v91_v38, %v68_v36  ;;  %v95_v48 = vmul.f32 %v94_v39, %v69_v37  ;;  %v101_v49 = vstv %s267_s8  ;;  %v104_v50 = vstv %s269_s9  ;;  %s198_s15 = sld [smem:[#allocation2 + $0x1b]] }
  0x23   :  { %v76_v51 = vadd.f32 %v75_v44, %v72_v43  ;;  %v86_v52 = vadd.f32 %v85_v46, %v82_v45  ;;  %v102_v53 = vmul.f32 %v101_v49, %v68_v36  ;;  %v105_v54 = vmul.f32 %v104_v50, %v69_v37  ;;  %s290_s16 = sld [smem:[#allocation2 + $0x1d]] }
  0x24   :  { %v96_v55 = vadd.f32 %v95_v48, %v92_v47  ;;  %v108_v56 = vstv %s271_s10  ;;  %v111_v57 = vstv %s277_s11  ;;  %v131_v58 = vrot.slane %v69_v37, 7 }
  0x25   :  { %v79_v59 = vadd.f32 %v78_v40, %v76_v51  ;;  %v89_v60 = vadd.f32 %v88_v41, %v86_v52  ;;  %v106_v61 = vadd.f32 %v105_v54, %v102_v53  ;;  %v112_v62 = vmul.f32 %v111_v57, %v68_v36 }
  0x26   :  { %v99_v63 = vadd.f32 %v98_v42, %v96_v55  ;;  %v114_v0 = vstv %s281_s12  ;;  %v118_v1 = vstv %s286_s13  ;;  %v152_v2 = vsel %vm151_vm0, %v68_v36, %v131_v58 }
  0x27   :  { %v109_v3 = vadd.f32 %v108_v56, %v106_v61  ;;  %v115_v4 = vmul.f32 %v114_v0, %v69_v37  ;;  %v121_v5 = vstv %s197_s14  ;;  %v134_v6 = vrot.slane %v79_v59, 6 }
  0x28   :  { %v122_v7 = vmul.f32 %v121_v5, %v68_v36  ;;  %v124_v8 = vstv %s198_s15  ;;  %v137_v9 = vrot.slane %v89_v60, 5  ;;  %v140_v10 = vrot.slane %v99_v63, 4 }
  0x29   :  { %v116_v11 = vadd.f32 %v115_v4, %v112_v62  ;;  %v125_v12 = vmul.f32 %v124_v8, %v69_v37  ;;  %v143_v13 = vrot.slane %v109_v3, 3  ;;  %v128_v14 = vstv %s290_s16 }
  0x2a   :  { %v154_v15 = vsel %vm153_vm1, %v152_v2, %v134_v6 }
  0x2b   :  { %v119_v16 = vadd.f32 %v118_v1, %v116_v11  ;;  %v126_v17 = vadd.f32 %v125_v12, %v122_v7  ;;  %v156_v18 = vsel %vm155_vm2, %v154_v15, %v137_v9 }
  0x2c   :  { %v158_v19 = vsel %vm157_vm3, %v156_v18, %v140_v10 }
  0x2d   :  { %v129_v20 = vadd.f32 %v128_v14, %v126_v17  ;;  %v146_v21 = vrot.slane %v119_v16, 2  ;;  %v160_v22 = vsel %vm159_vm4, %v158_v19, %v143_v13 }
  0x2f   :  { %v149_v23 = vrot.slane %v129_v20, 1  ;;  %v162_v24 = vsel %vm161_vm5, %v160_v22, %v146_v21 }
  0x31   :  { %v164_v25 = vsel %vm163_vm6, %v162_v24, %v149_v23 }
  0x32   :  { %165 = vst [vmem:[%s305_s2] sm:$0xff] %v164_v25 }
  0x33   :  { %170 = vsyncpa [#allocation3], 1 }

</bundles_post_ra>
